<compile_context>
chip_gen: v5e
topology: v5e:2x2
jax: 0.10.0
libtpu: 0.0.40
codegen_flags: <defaults>
</compile_context>

<pallas_src>
import jax
import jax.numpy as jnp
from jax.experimental import pallas as pl
from jax.experimental.pallas import tpu as pltpu

_MAX_TILE_B = 4096  # safe for v7x's tighter 64 MiB VMEM / 32 MiB scoped default


def _round_up(x, m):
    return ((x + m - 1) // m) * m


def _critic_kernel(s_ref, a_ref, w1s_ref, w1a_ref, b1_ref,
                   w2_ref, b2_ref, w3_ref, b3_ref, o_ref):
    # Fused concat: first-layer matmul split into state-part + action-part.
    s = s_ref[...].astype(jnp.float32)
    a = a_ref[...].astype(jnp.float32)
    h1 = jnp.dot(s, w1s_ref[...], preferred_element_type=jnp.float32)
    h1 = h1 + jnp.dot(a, w1a_ref[...], preferred_element_type=jnp.float32)
    h1 = jnp.maximum(h1 + b1_ref[...], 0.0)

    h2 = jnp.dot(h1, w2_ref[...], preferred_element_type=jnp.float32) + b2_ref[...]
    h2 = jnp.maximum(h2, 0.0)

    o_ref[...] = (
        jnp.dot(h2, w3_ref[...], preferred_element_type=jnp.float32) + b3_ref[...]
    ).astype(o_ref.dtype)


@jax.jit
def critic_forward(state, action, params):
    """Pallas implementation of Network_Critic.forward(state, action)."""
    (w1, b1), (w2, b2), (w3, b3) = params
    batch, state_dim = state.shape
    action_dim = action.shape[1]
    h1_dim = w1.shape[1]
    h2_dim = w2.shape[1]

    # bf16 storage for the batch-sized inputs (dominant HBM traffic).
    state = state.astype(jnp.bfloat16)
    action = action.astype(jnp.bfloat16)

    # Split first-layer weight so concat(state, action) @ w1 becomes two dots.
    w1_s = w1[:state_dim].astype(jnp.float32)
    w1_a = w1[state_dim:].astype(jnp.float32)
    b1 = b1.astype(jnp.float32)
    w2 = w2.astype(jnp.float32)
    b2 = b2.astype(jnp.float32)
    w3 = w3.astype(jnp.float32)
    b3 = b3.astype(jnp.float32)

    tile_b = min(_MAX_TILE_B, _round_up(batch, 8))
    padded = _round_up(batch, tile_b)
    if padded != batch:
        pad = padded - batch
        state = jnp.pad(state, ((0, pad), (0, 0)))
        action = jnp.pad(action, ((0, pad), (0, 0)))

    out = pl.pallas_call(
        _critic_kernel,
        out_shape=jax.ShapeDtypeStruct((padded, 1), jnp.float32),
        grid=(padded // tile_b,),
        in_specs=[
            # Batch-tiled activations (auto double-buffered HBM->VMEM DMA).
            pl.BlockSpec((tile_b, state_dim), lambda i: (i, 0)),
            pl.BlockSpec((tile_b, action_dim), lambda i: (i, 0)),
            # Weights / biases: constant index_map -> loaded once, VMEM-resident.
            pl.BlockSpec((state_dim, h1_dim), lambda i: (0, 0)),
            pl.BlockSpec((action_dim, h1_dim), lambda i: (0, 0)),
            pl.BlockSpec((1, h1_dim), lambda i: (0, 0)),
            pl.BlockSpec((h1_dim, h2_dim), lambda i: (0, 0)),
            pl.BlockSpec((1, h2_dim), lambda i: (0, 0)),
            pl.BlockSpec((h2_dim, 1), lambda i: (0, 0)),
            pl.BlockSpec((1, 1), lambda i: (0, 0)),
        ],
        out_specs=pl.BlockSpec((tile_b, 1), lambda i: (i, 0)),
        compiler_params=pltpu.CompilerParams(
            dimension_semantics=("parallel",),  # megacore sharding on v7x
        ),
    )(state, action, w1_s, w1_a, b1, w2, b2, w3, b3)

    return out[:batch]


def init_params(key, state_dim, action_dim, hidden_dims=(128, 64)):
    """Deterministic init matching nn.Linear shapes (uniform(-1/sqrt(fan_in), +))."""
    dims = [state_dim + action_dim] + list(hidden_dims) + [1]
    params = []
    for i in range(len(dims) - 1):
        fan_in, fan_out = dims[i], dims[i + 1]
        key, kw, kb = jax.random.split(key, 3)
        bound = 1.0 / jnp.sqrt(jnp.float32(fan_in))
        # Stored as (in, out): transpose of PyTorch's (out, in) weight.
        w = jax.random.uniform(kw, (fan_in, fan_out), jnp.float32, -bound, bound)
        b = jax.random.uniform(kb, (1, fan_out), jnp.float32, -bound, bound)
        params.append((w, b))
    return params


def _reference_forward(state, action, params):
    # Mirror the kernel's bf16 input storage so the comparison is apples-to-apples.
    state = state.astype(jnp.bfloat16).astype(jnp.float32)
    action = action.astype(jnp.bfloat16).astype(jnp.float32)
    x = jnp.concatenate([state, action], axis=1)
    (w1, b1), (w2, b2), (w3, b3) = params
    x = jnp.maximum(x @ w1 + b1, 0.0)
    x = jnp.maximum(x @ w2 + b2, 0.0)
    return x @ w3 + b3


if __name__ == "__main__":
    key = jax.random.PRNGKey(0)
    state_dim, action_dim, batch = 16, 8, 8

    k_params, k_state, k_action = jax.random.split(key, 3)
    params = init_params(k_params, state_dim, action_dim)
    state = jax.random.normal(k_state, (batch, state_dim), jnp.float32)
    action = jax.random.normal(k_action, (batch, action_dim), jnp.float32)

    out = critic_forward(state, action, params)
    out = jax.block_until_ready(out)

    ref = _reference_forward(state, action, params)
    assert out.shape == (batch, 1)
    assert jnp.allclose(out, ref, atol=1e-3, rtol=1e-3), (
        jnp.max(jnp.abs(out - ref)))
    print("KERNEL_OK")
</pallas_src>

<mosaic_0001>
module attributes {stable_mosaic.version = 11 : i64} {
  func.func @_critic_kernel(%arg0: i32, %arg1: memref<8x16xbf16, #tpu.memory_space<vmem>>, %arg2: memref<8x8xbf16, #tpu.memory_space<vmem>>, %arg3: memref<16x128xf32, #tpu.memory_space<vmem>>, %arg4: memref<8x128xf32, #tpu.memory_space<vmem>>, %arg5: memref<1x128xf32, #tpu.memory_space<vmem>>, %arg6: memref<128x64xf32, #tpu.memory_space<vmem>>, %arg7: memref<1x64xf32, #tpu.memory_space<vmem>>, %arg8: memref<64x1xf32, #tpu.memory_space<vmem>>, %arg9: memref<1x1xf32, #tpu.memory_space<vmem>>, %arg10: memref<8x1xf32, #tpu.memory_space<vmem>>) attributes {dimension_semantics = [#tpu.dimension_semantics<parallel>], iteration_bounds = array<i64: 1>, scalar_prefetch = 0 : i64, scratch_operands = 0 : i64, tpu.core_type = #tpu.core_type<tc>, window_params = [{transform_indices = @transform_0, window_bounds = array<i64: 8, 16>}, {transform_indices = @transform_1, window_bounds = array<i64: 8, 8>}, {pipeline_mode = #tpu.pipeline_mode<synchronous>, transform_indices = @transform_2, window_bounds = array<i64: 16, 128>}, {pipeline_mode = #tpu.pipeline_mode<synchronous>, transform_indices = @transform_3, window_bounds = array<i64: 8, 128>}, {pipeline_mode = #tpu.pipeline_mode<synchronous>, transform_indices = @transform_4, window_bounds = array<i64: 1, 128>}, {pipeline_mode = #tpu.pipeline_mode<synchronous>, transform_indices = @transform_5, window_bounds = array<i64: 128, 64>}, {pipeline_mode = #tpu.pipeline_mode<synchronous>, transform_indices = @transform_6, window_bounds = array<i64: 1, 64>}, {pipeline_mode = #tpu.pipeline_mode<synchronous>, transform_indices = @transform_7, window_bounds = array<i64: 64, 1>}, {pipeline_mode = #tpu.pipeline_mode<synchronous>, transform_indices = @transform_8, window_bounds = array<i64: 1, 1>}, {transform_indices = @transform_9, window_bounds = array<i64: 8, 1>}]} {
    %c0 = arith.constant 0 : index
    %c0_0 = arith.constant 0 : index
    %0 = vector.load %arg1[%c0, %c0_0] : memref<8x16xbf16, #tpu.memory_space<vmem>>, vector<8x16xbf16>
    %1 = arith.extf %0 : vector<8x16xbf16> to vector<8x16xf32>
    %c0_1 = arith.constant 0 : index
    %c0_2 = arith.constant 0 : index
    %2 = vector.load %arg2[%c0_1, %c0_2] : memref<8x8xbf16, #tpu.memory_space<vmem>>, vector<8x8xbf16>
    %3 = arith.extf %2 : vector<8x8xbf16> to vector<8x8xf32>
    %c0_3 = arith.constant 0 : index
    %c0_4 = arith.constant 0 : index
    %4 = vector.load %arg3[%c0_3, %c0_4] : memref<16x128xf32, #tpu.memory_space<vmem>>, vector<16x128xf32>
    %cst = arith.constant dense<0.000000e+00> : vector<8x128xf32>
    %5 = tpu.matmul %1, %4, %cst {dimension_numbers = #tpu.dot_dimension_numbers<[1], [0], [0], [1], [0, 0, 1, 1], [], []>} : vector<8x16xf32>, vector<16x128xf32>, vector<8x128xf32> -> vector<8x128xf32>
    %c0_5 = arith.constant 0 : index
    %c0_6 = arith.constant 0 : index
    %6 = vector.load %arg4[%c0_5, %c0_6] : memref<8x128xf32, #tpu.memory_space<vmem>>, vector<8x128xf32>
    %cst_7 = arith.constant dense<0.000000e+00> : vector<8x128xf32>
    %7 = tpu.matmul %3, %6, %cst_7 {dimension_numbers = #tpu.dot_dimension_numbers<[1], [0], [0], [1], [0, 0, 1, 1], [], []>} : vector<8x8xf32>, vector<8x128xf32>, vector<8x128xf32> -> vector<8x128xf32>
    %8 = arith.addf %5, %7 : vector<8x128xf32>
    %c0_8 = arith.constant 0 : index
    %c0_9 = arith.constant 0 : index
    %9 = vector.load %arg5[%c0_8, %c0_9] : memref<1x128xf32, #tpu.memory_space<vmem>>, vector<1x128xf32>
    %10 = vector.broadcast %9 : vector<1x128xf32> to vector<8x128xf32>
    %11 = arith.addf %8, %10 : vector<8x128xf32>
    %cst_10 = arith.constant 0.000000e+00 : f32
    %12 = vector.broadcast %cst_10 : f32 to vector<8x128xf32>
    %13 = arith.maximumf %11, %12 : vector<8x128xf32>
    %c0_11 = arith.constant 0 : index
    %c0_12 = arith.constant 0 : index
    %14 = vector.load %arg6[%c0_11, %c0_12] : memref<128x64xf32, #tpu.memory_space<vmem>>, vector<128x64xf32>
    %cst_13 = arith.constant dense<0.000000e+00> : vector<8x64xf32>
    %15 = tpu.matmul %13, %14, %cst_13 {dimension_numbers = #tpu.dot_dimension_numbers<[1], [0], [0], [1], [0, 0, 1, 1], [], []>} : vector<8x128xf32>, vector<128x64xf32>, vector<8x64xf32> -> vector<8x64xf32>
    %c0_14 = arith.constant 0 : index
    %c0_15 = arith.constant 0 : index
    %16 = vector.load %arg7[%c0_14, %c0_15] : memref<1x64xf32, #tpu.memory_space<vmem>>, vector<1x64xf32>
    %17 = vector.broadcast %16 : vector<1x64xf32> to vector<8x64xf32>
    %18 = arith.addf %15, %17 : vector<8x64xf32>
    %cst_16 = arith.constant 0.000000e+00 : f32
    %19 = vector.broadcast %cst_16 : f32 to vector<8x64xf32>
    %20 = arith.maximumf %18, %19 : vector<8x64xf32>
    %c0_17 = arith.constant 0 : index
    %c0_18 = arith.constant 0 : index
    %21 = vector.load %arg8[%c0_17, %c0_18] : memref<64x1xf32, #tpu.memory_space<vmem>>, vector<64x1xf32>
    %cst_19 = arith.constant dense<0.000000e+00> : vector<8x1xf32>
    %22 = tpu.matmul %20, %21, %cst_19 {dimension_numbers = #tpu.dot_dimension_numbers<[1], [0], [0], [1], [0, 0, 1, 1], [], []>} : vector<8x64xf32>, vector<64x1xf32>, vector<8x1xf32> -> vector<8x1xf32>
    %c0_20 = arith.constant 0 : index
    %c0_21 = arith.constant 0 : index
    %23 = vector.load %arg9[%c0_20, %c0_21] : memref<1x1xf32, #tpu.memory_space<vmem>>, vector<1x1xf32>
    %24 = vector.broadcast %23 : vector<1x1xf32> to vector<8x1xf32>
    %25 = arith.addf %22, %24 : vector<8x1xf32>
    %c0_22 = arith.constant 0 : index
    %c0_23 = arith.constant 0 : index
    %26 = vector.load %arg10[%c0_22, %c0_23] : memref<8x1xf32, #tpu.memory_space<vmem>>, vector<8x1xf32>
    tpu.vector_store %arg10[%c0_22, %c0_23], %25 {strides = array<i32>} : memref<8x1xf32, #tpu.memory_space<vmem>>, vector<8x1xf32>,
    return
  }
  func.func @transform_0(%arg0: i32) -> (i32, i32) {
    %c0_i32 = arith.constant 0 : i32
    %c0_i32_0 = arith.constant 0 : i32
    return %arg0, %c0_i32 : i32, i32
  }
  func.func @transform_1(%arg0: i32) -> (i32, i32) {
    %c0_i32 = arith.constant 0 : i32
    %c0_i32_0 = arith.constant 0 : i32
    return %arg0, %c0_i32 : i32, i32
  }
  func.func @transform_2(%arg0: i32) -> (i32, i32) {
    %c0_i32 = arith.constant 0 : i32
    %c0_i32_0 = arith.constant 0 : i32
    %c0_i32_1 = arith.constant 0 : i32
    return %c0_i32, %c0_i32_0 : i32, i32
  }
  func.func @transform_3(%arg0: i32) -> (i32, i32) {
    %c0_i32 = arith.constant 0 : i32
    %c0_i32_0 = arith.constant 0 : i32
    %c0_i32_1 = arith.constant 0 : i32
    return %c0_i32, %c0_i32_0 : i32, i32
  }
  func.func @transform_4(%arg0: i32) -> (i32, i32) {
    %c0_i32 = arith.constant 0 : i32
    %c0_i32_0 = arith.constant 0 : i32
    %c0_i32_1 = arith.constant 0 : i32
    return %c0_i32, %c0_i32_0 : i32, i32
  }
  func.func @transform_5(%arg0: i32) -> (i32, i32) {
    %c0_i32 = arith.constant 0 : i32
    %c0_i32_0 = arith.constant 0 : i32
    %c0_i32_1 = arith.constant 0 : i32
    return %c0_i32, %c0_i32_0 : i32, i32
  }
  func.func @transform_6(%arg0: i32) -> (i32, i32) {
    %c0_i32 = arith.constant 0 : i32
    %c0_i32_0 = arith.constant 0 : i32
    %c0_i32_1 = arith.constant 0 : i32
    return %c0_i32, %c0_i32_0 : i32, i32
  }
  func.func @transform_7(%arg0: i32) -> (i32, i32) {
    %c0_i32 = arith.constant 0 : i32
    %c0_i32_0 = arith.constant 0 : i32
    %c0_i32_1 = arith.constant 0 : i32
    return %c0_i32, %c0_i32_0 : i32, i32
  }
  func.func @transform_8(%arg0: i32) -> (i32, i32) {
    %c0_i32 = arith.constant 0 : i32
    %c0_i32_0 = arith.constant 0 : i32
    %c0_i32_1 = arith.constant 0 : i32
    return %c0_i32, %c0_i32_0 : i32, i32
  }
  func.func @transform_9(%arg0: i32) -> (i32, i32) {
    %c0_i32 = arith.constant 0 : i32
    %c0_i32_0 = arith.constant 0 : i32
    return %arg0, %c0_i32 : i32, i32
  }
}

</mosaic_0001>

<bundles_post_ra>
// kernel: critic_forward.1
= control target key start
LH: loop header
LB: loop body
LE: loop exit
PB: predicated region body
PF: predicated region fallthrough
CT: control target
= control target key end

     0   :  { %vm41_vm0 = vcmask 64512   ;;  %vm65_vm1 = vcmask 130048   ;;  %vm148_vm2 = vcmask 523264   ;;  %vm172_vm3 = vcmask 7168   ;;  %s333_s2 = inlined_call_operand.vmem [shape: f32[16,128], index: 2, kind: input, shape index: {}]   ;;  %s334_s3 = inlined_call_operand.vmem [shape: f32[8,128], index: 3, kind: input, shape index: {}]   ;;  %s335_s1 = inlined_call_operand.vmem [shape: bf16[8,8], index: 1, kind: input, shape index: {}]   ;;  %s336_s0 = inlined_call_operand.vmem [shape: bf16[8,16], index: 0, kind: input, shape index: {}]   ;;  %s337_s5 = inlined_call_operand.vmem [shape: f32[128,64], index: 5, kind: input, shape index: {}]   ;;  %s338_s4 = inlined_call_operand.vmem [shape: f32[1,128], index: 4, kind: input, shape index: {}]   ;;  %s339_s6 = inlined_call_operand.vmem [shape: f32[1,64], index: 6, kind: input, shape index: {}]   ;;  %s340_s7 = inlined_call_operand.vmem [shape: f32[64,1], index: 7, kind: input, shape index: {}]   ;;  %s341_s8 = inlined_call_operand.<no memory space> [shape: f32[1,1], index: 8, kind: input, shape index: {}]   ;;  %s342_s9 = inlined_call_operand.vmem [shape: f32[8,1], index: 9, kind: output, shape index: {}]  }
   0x1   :  { %v39_v0 = vld [vmem:[%s333_s2 + $0x8] sm:$0xff]  ;;  %v40_v1 = vld [vmem:[%s334_s3] sm:$0xff]  ;;  %v110_v5 = vld [vmem:[%s337_s5 + $0x78] sm:$0xff]  ;;  %v14_v37 = vstv %s341_s8 }
   0x2   :  { %v38_v2 = vld [vmem:[%s333_s2] sm:$0xff]  ;;  %83 = vmatpush.msra.mxu1 %v39_v0  ;;  %60 = vmatpush.msra.mxu0 %v40_v1  ;;  %v109_v8 = vld [vmem:[%s337_s5 + $0x70] sm:$0xff]  ;;  %v108_v9 = vld [vmem:[%s337_s5 + $0x68] sm:$0xff]  ;;  %15 = vst [vmem:[#allocation2] sm:$0x1] %v14_v37 }
   0x3   :  { %v36_v3 = vld [vmem:[%s335_s1] sm:$0xf]  ;;  %115 = vmatpush.msra.mxu2 %v110_v5  ;;  %v106_v11 = vld [vmem:[%s337_s5 + $0x58] sm:$0xff]  ;;  %v105_v12 = vld [vmem:[%s337_s5 + $0x50] sm:$0xff] }
   0x4   :  { %v34_v4 = vld [vmem:[%s336_s0] sm:$0xf]  ;;  %v37_v6 = vunpack.c.l.bf16 %v36_v3  ;;  %84 = vmatpush.msra.mxu1 %v38_v2  ;;  %v104_v13 = vld [vmem:[%s337_s5 + $0x48] sm:$0xff]  ;;  %v102_v15 = vld [vmem:[%s337_s5 + $0x38] sm:$0xff] }
   0x5   :  { %v35_v7 = vunpack.c.l.bf16 %v34_v4  ;;  %116 = vmatpush.msra.mxu2 %v109_v8  ;;  %v107_v10 = vld [vmem:[%s337_s5 + $0x60] sm:$0xff]  ;;  %v101_v16 = vld [vmem:[%s337_s5 + $0x30] sm:$0xff]  ;;  %v100_v17 = vld [vmem:[%s337_s5 + $0x28] sm:$0xff] }
   0x6   :  { %178 = vmatmul.msk.f32.vlgmr.msra.gmra.mxu0 %vm41_vm0, %v37_v6  ;;  %v103_v14 = vld [vmem:[%s337_s5 + $0x40] sm:$0xff]  ;;  %v98_v19 = vld [vmem:[%s337_s5 + $0x18] sm:$0xff]  ;;  %v97_v20 = vld [vmem:[%s337_s5 + $0x10] sm:$0xff] }
   0x7   :  { %179 = vmatmul.msk.f32.vlgmr.msra.gmra.mxu1 %vm65_vm1, %v35_v7  ;;  %117 = vmatpush.msra.mxu2 %v108_v9  ;;  %v99_v18 = vld [vmem:[%s337_s5 + $0x20] sm:$0xff]  ;;  %v96_v21 = vld [vmem:[%s337_s5 + $0x8] sm:$0xff]  ;;  %v143_v23 = vld [vmem:[%s340_s7 + $0x38] sm:$0xff] }
   0x8   :  { %v95_v22 = vld [vmem:[%s337_s5] sm:$0xff]  ;;  %v142_v24 = vld [vmem:[%s340_s7 + $0x30] sm:$0xff]  ;;  %160 = vmatpush.msra.mxu3 %v143_v23  ;;  %v141_v25 = vld [vmem:[%s340_s7 + $0x28] sm:$0xff] }
   0x9   :  { %118 = vmatpush.msra.mxu2 %v107_v10  ;;  %v140_v26 = vld [vmem:[%s340_s7 + $0x20] sm:$0xff]  ;;  %v139_v27 = vld [vmem:[%s340_s7 + $0x18] sm:$0xff]  ;;  %v138_v34 = vld [vmem:[%s340_s7 + $0x10] sm:$0xff] }
   0xa   :  { %161 = vmatpush.msra.mxu3 %v142_v24  ;;  %v181_v28 = vld [vmem:[%s338_s4] ss:$0 sm:$0xff]  ;;  %v137_v35 = vld [vmem:[%s340_s7 + $0x8] sm:$0xff] }
   0xb   :  { %119 = vmatpush.msra.mxu2 %v106_v11  ;;  %v136_v36 = vld [vmem:[%s340_s7] sm:$0xff] }
   0xc   :  { %162 = vmatpush.msra.mxu3 %v141_v25  ;;  %v182_v38 = vld [vmem:[%s339_s6] ss:$0 sm:$0xff] }
   0xd   :  { %120 = vmatpush.msra.mxu2 %v105_v12  ;;  %v183_v42 = vld [vmem:[#allocation2] ss:$0 sm:$0xff] }
   0xe   :  { %163 = vmatpush.msra.mxu3 %v140_v26 }
   0xf   :  { %121 = vmatpush.msra.mxu2 %v104_v13 }
  0x10   :  { %164 = vmatpush.msra.mxu3 %v139_v27 }
  0x11   :  { %122 = vmatpush.msra.mxu2 %v103_v14 }
  0x12   :  { %165 = vmatpush.msra.mxu3 %v138_v34 }
  0x13   :  { %123 = vmatpush.msra.mxu2 %v102_v15 }
  0x14   :  { %166 = vmatpush.msra.mxu3 %v137_v35 }
  0x15   :  { %124 = vmatpush.msra.mxu2 %v101_v16 }
  0x16   :  { %167 = vmatpush.msra.mxu3 %v136_v36 }
  0x17   :  { %125 = vmatpush.msra.mxu2 %v100_v17 }
  0x19   :  { %126 = vmatpush.msra.mxu2 %v99_v18 }
  0x1b   :  { %127 = vmatpush.msra.mxu2 %v98_v19 }
  0x1d   :  { %128 = vmatpush.msra.mxu2 %v97_v20 }
  0x1f   :  { %129 = vmatpush.msra.mxu2 %v96_v21 }
  0x21   :  { %130 = vmatpush.msra.mxu2 %v95_v22 }
  0x83   :  { %v62_v29 = vpop.f32.mrf.mxu0 }
  0x84   :  { %v86_v30 = vpop.f32.mrf.mxu1 }
  0x85   :  { %v87_v31 = vadd.f32 %v86_v30, %v62_v29 }
  0x87   :  { %v93_v32 = vadd.f32 %v181_v28, %v87_v31 }
  0x89   :  { %v94_v33 = vmax.f32 %v93_v32, 0.0 }
  0x8b   :  { %131 = vmatmul.f32.vlgmr.msra.gmra.mxu2 %v94_v33 }
 0x10e   :  { %v132_v39 = vpop.f32.mrf.mxu2 }
 0x10f   :  { %v133_v40 = vadd.f32 %v182_v38, %v132_v39 }
 0x111   :  { %v135_v41 = vmax.f32 %v133_v40, 0.0 }
 0x113   :  { %180 = vmatmul.msk.f32.vlgmr.msra.gmra.mxu3 %vm148_vm2, %v135_v41 }
 0x196   :  { %v169_v43 = vpop.f32.mrf.mxu3 }
 0x197   :  { %v170_v44 = vadd.f32 %v183_v42, %v169_v43 }
 0x199   :  { %173 = vst.msk [vmem:[%s342_s9] sm:$0xff] %vm172_vm3, %v170_v44 }

</bundles_post_ra>
